<compile_context>
chip_gen: v6e
topology: v6e:2x2x1
jax: 0.10.0
libtpu: 0.0.40
codegen_flags: <defaults>
</compile_context>

<pallas_src>
import jax
import jax.numpy as jnp
import numpy as np
from jax.experimental import pallas as pl
from jax.experimental.pallas import tpu as pltpu

B, N, J, F_IN, F_OUT = 2, 8, 2, 4, 8
NUM_INPUTS = J * F_IN
EPS = 1e-5


def gconv_kernel(w_ref, x_ref, fcw_ref, gamma_ref, beta_ref, out_ref):
    # Shapes seen by the kernel (everything VMEM-resident, single invocation):
    #   w_ref:     (B, N, J*N)      adjacency stack, contraction index = j*N + m
    #   x_ref:     (B*N, F_IN)      node features, rows flattened over (b, n)
    #   fcw_ref:   (J, F_IN, F_OUT) fc weight, regrouped per adjacency operator
    #   gamma/beta:(1, F_OUT)
    #   out_ref:   (B, N, F_OUT)
    x = x_ref[...]

    # ---- fused gmul + fc ------------------------------------------------------------
    # xw_j = x @ fcw_j  (one small 2-D MXU matmul per j), stacked j-major along the
    # contraction (sublane) axis -> (B, J*N, F_OUT); then a single batched MXU matmul
    # against W.  No lane-axis concat, no intermediate (N, J*F_in) tensor.
    xw = [
        jnp.dot(x, fcw_ref[j], preferred_element_type=jnp.float32).reshape(B, N, F_OUT)
        for j in range(J)
    ]
    xw = jnp.concatenate(xw, axis=1)                        # (B, J*N, F_OUT)
    y = jnp.einsum('bnk,bko->bno', w_ref[...], xw,
                   preferred_element_type=jnp.float32)      # (B, N, F_OUT)

    # fc bias intentionally omitted: BN's batch-mean subtraction cancels it exactly.

    # ---- BatchNorm1d (training-mode batch statistics over all B*N rows) -------------
    inv_rows = jnp.float32(1.0 / (B * N))
    mean = jnp.sum(y, axis=(0, 1), keepdims=True) * inv_rows
    centered = y - mean
    var = jnp.sum(centered * centered, axis=(0, 1), keepdims=True) * inv_rows
    inv_std = jax.lax.rsqrt(var + EPS)
    out_ref[...] = centered * inv_std * gamma_ref[...] + beta_ref[...]


def gconv_forward(W, x, fc_weight, fc_bias, gamma, beta):
    """W: (B, N, N, J) f32, x: (B, N, F_in) f32 -> (W, y) with y: (B, N, F_out)."""
    del fc_bias  # cancelled exactly by training-mode BatchNorm (mean subtraction)

    # j-major adjacency stack: (B, N, N, J) -> (B, N, J, N) -> (B, N, J*N).
    # (Small last-two-axes transpose; see header note -- store W j-major upstream to
    #  eliminate it entirely at real sizes.)
    Wc = jnp.transpose(W, (0, 1, 3, 2)).reshape(B, N, J * N).astype(jnp.float32)
    # Flatten node features over (b, n); pure row-major reshape, no data movement.
    x2 = x.reshape(B * N, F_IN).astype(jnp.float32)
    # fc weight (F_OUT, J*F_IN) -> (J, F_IN, F_OUT): tiny one-off parameter shuffle.
    fcw = jnp.transpose(fc_weight.reshape(F_OUT, J, F_IN), (1, 2, 0)).astype(jnp.float32)
    g = gamma.reshape(1, F_OUT).astype(jnp.float32)
    bt = beta.reshape(1, F_OUT).astype(jnp.float32)

    vmem_spec = pl.BlockSpec(memory_space=pltpu.MemorySpace.VMEM)
    y = pl.pallas_call(
        gconv_kernel,
        out_shape=jax.ShapeDtypeStruct((B, N, F_OUT), jnp.float32),
        in_specs=[vmem_spec] * 5,
        out_specs=vmem_spec,
    )(Wc, x2, fcw, g, bt)
    return W, y


def gconv_reference(W, x, fc_weight, fc_bias, gamma, beta):
    xg = jnp.einsum('bnmj,bmf->bnjf', W, x).reshape(B, N, NUM_INPUTS)
    y = xg @ fc_weight.T + fc_bias
    yf = y.reshape(B * N, F_OUT)
    mean = yf.mean(axis=0)
    var = ((yf - mean) ** 2).mean(axis=0)
    yn = (yf - mean) / jnp.sqrt(var + EPS) * gamma + beta
    return yn.reshape(B, N, F_OUT)


if __name__ == "__main__":
    key = jax.random.PRNGKey(0)
    k_w, k_x, k_fw, k_fb = jax.random.split(key, 4)

    W = jax.random.normal(k_w, (B, N, N, J), dtype=jnp.float32)
    x = jax.random.normal(k_x, (B, N, F_IN), dtype=jnp.float32)

    # nn.Linear default init: U(-1/sqrt(fan_in), 1/sqrt(fan_in))
    bound = 1.0 / np.sqrt(NUM_INPUTS)
    fc_weight = jax.random.uniform(k_fw, (F_OUT, NUM_INPUTS), jnp.float32, -bound, bound)
    fc_bias = jax.random.uniform(k_fb, (F_OUT,), jnp.float32, -bound, bound)
    # BatchNorm1d default affine params
    gamma = jnp.ones((F_OUT,), jnp.float32)
    beta = jnp.zeros((F_OUT,), jnp.float32)

    W_out, y = gconv_forward(W, x, fc_weight, fc_bias, gamma, beta)
    y = jax.block_until_ready(y)

    y_ref = gconv_reference(W, x, fc_weight, fc_bias, gamma, beta)
    np.testing.assert_allclose(np.asarray(y), np.asarray(y_ref), rtol=2e-5, atol=2e-5)
    assert W_out.shape == (B, N, N, J) and y.shape == (B, N, F_OUT)

    print("KERNEL_OK")
</pallas_src>

<mosaic_0001>
module attributes {stable_mosaic.version = 11 : i64} {
  func.func @gconv_kernel(%arg0: memref<2x8x16xf32, #tpu.memory_space<vmem>>, %arg1: memref<16x4xf32, #tpu.memory_space<vmem>>, %arg2: memref<2x4x8xf32, #tpu.memory_space<vmem>>, %arg3: memref<1x8xf32, #tpu.memory_space<vmem>>, %arg4: memref<1x8xf32, #tpu.memory_space<vmem>>, %arg5: memref<2x8x8xf32, #tpu.memory_space<vmem>>) attributes {dimension_semantics = [], scalar_prefetch = 0 : i64, scratch_operands = 0 : i64, tpu.core_type = #tpu.core_type<tc>} {
    %c0 = arith.constant 0 : index
    %c0_0 = arith.constant 0 : index
    %0 = vector.load %arg1[%c0, %c0_0] : memref<16x4xf32, #tpu.memory_space<vmem>>, vector<16x4xf32>
    %c0_1 = arith.constant 0 : index
    %c0_2 = arith.constant 0 : index
    %c0_3 = arith.constant 0 : index
    %1 = vector.load %arg2[%c0_1, %c0_2, %c0_3] : memref<2x4x8xf32, #tpu.memory_space<vmem>>, vector<1x4x8xf32>
    %2 = vector.shape_cast %1 : vector<1x4x8xf32> to vector<4x8xf32>
    %cst = arith.constant dense<0.000000e+00> : vector<16x8xf32>
    %3 = tpu.matmul %0, %2, %cst {dimension_numbers = #tpu.dot_dimension_numbers<[1], [0], [0], [1], [0, 0, 1, 1], [], []>} : vector<16x4xf32>, vector<4x8xf32>, vector<16x8xf32> -> vector<16x8xf32>
    %4 = vector.shape_cast %3 : vector<16x8xf32> to vector<2x8x8xf32>
    %c1 = arith.constant 1 : index
    %c0_4 = arith.constant 0 : index
    %c0_5 = arith.constant 0 : index
    %5 = vector.load %arg2[%c1, %c0_4, %c0_5] : memref<2x4x8xf32, #tpu.memory_space<vmem>>, vector<1x4x8xf32>
    %6 = vector.shape_cast %5 : vector<1x4x8xf32> to vector<4x8xf32>
    %cst_6 = arith.constant dense<0.000000e+00> : vector<16x8xf32>
    %7 = tpu.matmul %0, %6, %cst_6 {dimension_numbers = #tpu.dot_dimension_numbers<[1], [0], [0], [1], [0, 0, 1, 1], [], []>} : vector<16x4xf32>, vector<4x8xf32>, vector<16x8xf32> -> vector<16x8xf32>
    %8 = vector.shape_cast %7 : vector<16x8xf32> to vector<2x8x8xf32>
    %9 = tpu.concatenate %4, %8 in 1 : vector<2x8x8xf32>, vector<2x8x8xf32> -> vector<2x16x8xf32>
    %c0_7 = arith.constant 0 : index
    %c0_8 = arith.constant 0 : index
    %c0_9 = arith.constant 0 : index
    %10 = vector.load %arg0[%c0_7, %c0_8, %c0_9] : memref<2x8x16xf32, #tpu.memory_space<vmem>>, vector<2x8x16xf32>
    "tpu.trace_start"() <{level = 10 : i32, message = "bnk,bko->bno"}> : () -> ()
    %cst_10 = arith.constant dense<0.000000e+00> : vector<2x8x8xf32>
    %11 = tpu.matmul %10, %9, %cst_10 {dimension_numbers = #tpu.dot_dimension_numbers<[2], [1], [1], [2], [0, 0, 0, 1, 1, 2], [0], [0]>} : vector<2x8x16xf32>, vector<2x16x8xf32>, vector<2x8x8xf32> -> vector<2x8x8xf32>
    "tpu.trace_stop"() : () -> ()
    %cst_11 = arith.constant dense<0.000000e+00> : vector<8xf32>
    %12 = vector.multi_reduction <add>, %11, %cst_11 [0, 1] : vector<2x8x8xf32> to vector<8xf32>
    %13 = vector.shape_cast %12 : vector<8xf32> to vector<1x1x8xf32>
    %cst_12 = arith.constant 6.250000e-02 : f32
    %14 = vector.broadcast %cst_12 : f32 to vector<1x1x8xf32>
    %15 = arith.mulf %13, %14 : vector<1x1x8xf32>
    %16 = vector.broadcast %15 : vector<1x1x8xf32> to vector<2x8x8xf32>
    %17 = arith.subf %11, %16 : vector<2x8x8xf32>
    %18 = arith.mulf %17, %17 : vector<2x8x8xf32>
    %cst_13 = arith.constant dense<0.000000e+00> : vector<8xf32>
    %19 = vector.multi_reduction <add>, %18, %cst_13 [0, 1] : vector<2x8x8xf32> to vector<8xf32>
    %20 = vector.shape_cast %19 : vector<8xf32> to vector<1x1x8xf32>
    %cst_14 = arith.constant 6.250000e-02 : f32
    %21 = vector.broadcast %cst_14 : f32 to vector<1x1x8xf32>
    %22 = arith.mulf %20, %21 : vector<1x1x8xf32>
    %cst_15 = arith.constant 9.99999974E-6 : f32
    %23 = vector.broadcast %cst_15 : f32 to vector<1x1x8xf32>
    %24 = arith.addf %22, %23 : vector<1x1x8xf32>
    %25 = math.rsqrt %24 : vector<1x1x8xf32>
    %26 = vector.broadcast %25 : vector<1x1x8xf32> to vector<2x8x8xf32>
    %27 = arith.mulf %17, %26 : vector<2x8x8xf32>
    %c0_16 = arith.constant 0 : index
    %c0_17 = arith.constant 0 : index
    %28 = vector.load %arg3[%c0_16, %c0_17] : memref<1x8xf32, #tpu.memory_space<vmem>>, vector<1x8xf32>
    %29 = vector.shape_cast %28 : vector<1x8xf32> to vector<1x1x8xf32>
    %30 = vector.broadcast %29 : vector<1x1x8xf32> to vector<2x8x8xf32>
    %31 = arith.mulf %27, %30 : vector<2x8x8xf32>
    %c0_18 = arith.constant 0 : index
    %c0_19 = arith.constant 0 : index
    %32 = vector.load %arg4[%c0_18, %c0_19] : memref<1x8xf32, #tpu.memory_space<vmem>>, vector<1x8xf32>
    %33 = vector.shape_cast %32 : vector<1x8xf32> to vector<1x1x8xf32>
    %34 = vector.broadcast %33 : vector<1x1x8xf32> to vector<2x8x8xf32>
    %35 = arith.addf %31, %34 : vector<2x8x8xf32>
    %c0_20 = arith.constant 0 : index
    %c0_21 = arith.constant 0 : index
    %c0_22 = arith.constant 0 : index
    %36 = vector.load %arg5[%c0_20, %c0_21, %c0_22] : memref<2x8x8xf32, #tpu.memory_space<vmem>>, vector<2x8x8xf32>
    tpu.vector_store %arg5[%c0_20, %c0_21, %c0_22], %35 {strides = array<i32>} : memref<2x8x8xf32, #tpu.memory_space<vmem>>, vector<2x8x8xf32>,
    return
  }
}

</mosaic_0001>

<bundles_post_ra>
// kernel: tpu_custom_call.1
= control target key start
LH: loop header
LB: loop body
LE: loop exit
PB: predicated region body
PF: predicated region fallthrough
CT: control target
= control target key end

     0   :  { %10 = vsyncpa [#allocation3], 0  ;;  %s587_s0 = inlined_call_operand.vmem [shape: f32[2,8,16], index: 0, kind: input, shape index: {}]   ;;  %s588_s1 = inlined_call_operand.vmem [shape: f32[16,4], index: 1, kind: input, shape index: {}]   ;;  %s589_s2 = inlined_call_operand.hbm [shape: f32[2,4,8], index: 2, kind: input, shape index: {}]   ;;  %s590_s3 = inlined_call_operand.vmem [shape: f32[1,8], index: 3, kind: input, shape index: {}]   ;;  %s591_s4 = inlined_call_operand.vmem [shape: f32[1,8], index: 4, kind: input, shape index: {}]   ;;  %s592_s5 = inlined_call_operand.hbm [shape: f32[2,8,8], index: 5, kind: output, shape index: {}]  }
   0x1   :  { %11 = vsyncpa [#allocation4], 0  ;;  %s519_s18 = smov [#allocation2]  }
   0x2   :  { %s21_s19 = sshll.u32 %s519_s18, 4  ;;  %s22_s19 = int_to_ptr.vmem [resolvable:$true] %s21_s19 }
   0x3   :  { %s483_s20 = scalar_lea.vmem %s22_s19, 128  ;;  %p488_p1 = scmp.lt.s32.totalorder %s22_s19, %s22_s19 }
   0x4   :  { %p484_p0 = scmp.ne.s32.totalorder %s22_s19, %s483_s20  ;;  %p489_p2 = scmp.lt.s32.totalorder %s483_s20, %s483_s20 }
   0x6   :  { %p490_p3 = por %p489_p2, %p488_p1 }
   0x8   :  { %p491_p4 = pnand %p490_p3, %p484_p0 }
   0xa   :  { %494 = shalt.err (!%p491_p4)
}
   0xb   :  { %s520_s21 = smov 64   ;;  %s521_s22 = smov 4  }
   0xc   :  { %27 = dma.hbm_to_vmem [thread:$0]  %s589_s2, 128, %s22_s19, [#allocation3], %s520_s21, %s520_s21, %s521_s22  }
   0xd   :  { %515 = dma.done.wait [#allocation3], 128  }
   0xe   :  { %516 = vsyncadd [#allocation3], 4294967168  ;;  %vm45_vm0 = vcmask 1043456   ;;  %vm38_vm1 = vcmask 31744   ;;  %v37_v0 = vld [vmem:[#allocation2] sm:$0xf] }
   0xf   :  { %v125_v1 = vld [vmem:[#allocation2 + $0x4] sm:$0xf]  ;;  %441 = vmatprep.subr.msk.mxu0 %vm45_vm0, %v37_v0  ;;  %v36_v3 = vld [vmem:[%s588_s1 + $0x8] sm:$0xff]  ;;  %v522_v4 = vmov 0.0   ;;  %vm523_vm2 = vmmov 0   ;;  %vm206_vm3 = vcmask 130048  }
  0x10   :  { %v35_v2 = vld [vmem:[%s588_s1] sm:$0xff]  ;;  %446 = vmatprep.subr.msk.mxu1 %vm45_vm0, %v125_v1  ;;  %442 = vmatpush3.msk.msra.mxu0 %vm45_vm0, %v37_v0  ;;  %v205_v7 = vld [vmem:[%s587_s0 + $0x8] sm:$0xff]  ;;  %vm353_vm4 = vcmask 64512   ;;  %s524_s7 = smov [#allocation5]  }
  0x11   :  { %443 = vmatprep.mubr.msk.f32.mxu0 %vm38_vm1, %v35_v2  ;;  %447 = vmatpush3.msk.msra.mxu1 %vm45_vm0, %v125_v1  ;;  %v204_v9 = vld [vmem:[%s587_s0] sm:$0xff]  ;;  %s407_s8 = sshll.u32 %s524_s7, 4  ;;  %s408_s8 = int_to_ptr.vmem [resolvable:$true] %s407_s8 }
  0x12   :  { %448 = vmatprep.mubr.msk.f32.mxu1 %vm38_vm1, %v35_v2  ;;  %444 = vmatmul.mubr.msk.f32.vlgmr.msra.gmra.mxu0 %vm38_vm1, %v36_v3  ;;  %v427_v41 = vld [vmem:[%s590_s3] ss:$0 sm:$0xff]  ;;  %s495_s11 = scalar_lea.vmem %s408_s8, 256  ;;  %p500_p6 = scmp.lt.s32.totalorder %s408_s8, %s408_s8 }
  0x13   :  { %449 = vmatmul.mubr.msk.f32.vlgmr.msra.gmra.mxu1 %vm38_vm1, %v36_v3  ;;  %458 = vmatprep.subr.mxu1 %v522_v4  ;;  %v428_v44 = vld [vmem:[%s591_s4] ss:$0 sm:$0xff]  ;;  %p496_p5 = scmp.ne.s32.totalorder %s408_s8, %s495_s11  ;;  %p501_p7 = scmp.lt.s32.totalorder %s495_s11, %s495_s11 }
  0x14   :  { %451 = vmatprep.subr.mxu0 %v522_v4  ;;  %462 = vmatprep.mubr.msk.f32.mxu1 %vm523_vm2, %v522_v4 }
  0x15   :  { %455 = vmatprep.mubr.msk.f32.mxu0 %vm523_vm2, %v522_v4  ;;  %p502_p8 = por %p501_p7, %p500_p6 }
  0x17   :  { %p503_p9 = pnand %p502_p8, %p496_p5 }
  0xd2   :  { %v445_v5 = vpop.f32.mrf.mxu0 }
  0xd3   :  { %v450_v6 = vpop.f32.mrf.mxu1 }
  0xd4   :  { %459 = vmatpush3.msra.mxu1 %v450_v6  ;;  %v115_v10 = vpop.f32.mrf.mxu0 }
  0xd5   :  { %v195_v8 = vpop.f32.mrf.mxu1  ;;  %460 = vmatprep.subr.mxu1 %v522_v4 }
  0xd6   :  { %452 = vmatpush3.msra.mxu0 %v195_v8  ;;  %461 = vmatpush3.msra.mxu1 %v445_v5 }
  0xd7   :  { %453 = vmatprep.subr.mxu0 %v522_v4  ;;  %463 = vmatmul.mubr.msk.f32.vlgmr.msra.gmra.mxu1 %vm206_vm3, %v205_v7 }
  0xd8   :  { %454 = vmatpush3.msra.mxu0 %v115_v10 }
  0xd9   :  { %456 = vmatmul.mubr.msk.f32.vlgmr.msra.gmra.mxu0 %vm206_vm3, %v204_v9 }
 0x197   :  { %v349_v11 = vpop.f32.mrf.mxu1 }
 0x198   :  { %v355_v12 = vsel %vm353_vm4, %v349_v11, 0.0 }
 0x199   :  { %v276_v13 = vpop.f32.mrf.mxu0  ;;  %v464_v14 = vpop.f32.mrf.mxu1 }
 0x19a   :  { %v354_v15 = vsel %vm353_vm4, %v276_v13, 0.0 }
 0x19b   :  { %v356_v16 = vadd.f32 %v355_v12, %v354_v15  ;;  %v457_v17 = vpop.f32.mrf.mxu0 }
 0x19d   :  { %v357_v18 = vrot.slane %v356_v16, 4 }
 0x19f   :  { %v358_v19 = vadd.f32 %v357_v18, %v356_v16 }
 0x1a1   :  { %v359_v20 = vrot.slane %v358_v19, 2 }
 0x1a3   :  { %v360_v21 = vadd.f32 %v359_v20, %v358_v19 }
 0x1a5   :  { %v361_v22 = vrot.slane %v360_v21, 1 }
 0x1a7   :  { %v362_v23 = vadd.f32 %v361_v22, %v360_v21 }
 0x1a9   :  { %v363_v24 = vmul.f32 0.0625, %v362_v23 }
 0x1ab   :  { %v364_v25 = vsub.f32 %v276_v13, %v363_v24  ;;  %v365_v26 = vsub.f32 %v349_v11, %v363_v24 }
 0x1ad   :  { %v366_v27 = vmul.f32 %v364_v25, %v364_v25  ;;  %v367_v28 = vmul.f32 %v365_v26, %v365_v26 }
 0x1af   :  { %v368_v29 = vsel %vm353_vm4, %v366_v27, 0.0  ;;  %v369_v30 = vsel %vm353_vm4, %v367_v28, 0.0 }
 0x1b0   :  { %v370_v31 = vadd.f32 %v369_v30, %v368_v29 }
 0x1b2   :  { %v371_v32 = vrot.slane %v370_v31, 4 }
 0x1b4   :  { %v372_v33 = vadd.f32 %v371_v32, %v370_v31 }
 0x1b6   :  { %v373_v34 = vrot.slane %v372_v33, 2 }
 0x1b8   :  { %v374_v35 = vadd.f32 %v373_v34, %v372_v33 }
 0x1ba   :  { %v375_v36 = vrot.slane %v374_v35, 1 }
 0x1bc   :  { %v376_v37 = vadd.f32 %v375_v36, %v374_v35 }
 0x1be   :  { %v377_v38 = vmul.f32 0.0625, %v376_v37 }
 0x1c0   :  { %v378_v39 = vadd.f32 1e-05, %v377_v38 }
 0x1c2   :  { %473 = vrsqrt.f32 %v378_v39 }
 0x1cf   :  { %v474_v40 = vpop.eup %473 }
 0x1d0   :  { %v380_v42 = vmul.f32 %v474_v40, %v364_v25  ;;  %v381_v43 = vmul.f32 %v474_v40, %v365_v26 }
 0x1d2   :  { %v389_v45 = vmul.f32 %v427_v41, %v380_v42  ;;  %v390_v46 = vmul.f32 %v427_v41, %v381_v43 }
 0x1d4   :  { %v398_v47 = vadd.f32 %v428_v44, %v389_v45  ;;  %v399_v48 = vadd.f32 %v428_v44, %v390_v46 }
 0x1d6   :  { %400 = vst.msk [vmem:[#allocation5] sm:$0xff] %vm353_vm4, %v398_v47  ;;  %401 = vst.msk [vmem:[#allocation5 + $0x8] sm:$0xff] %vm353_vm4, %v399_v48 }
 0x1d7   :  { %506 = shalt.err (!%p503_p9)
}
 0x1d8   :  { %s525_s3 = smov 128   ;;  %s526_s12 = smov 8  }
 0x1d9   :  { %413 = dma.vmem_to_hbm [thread:$0]  %s408_s8, 256, %s592_s5, [#allocation4], %s525_s3, %s525_s3, %s526_s12  }
 0x1da   :  { %517 = dma.done.wait [#allocation4], 256  }
 0x1db   :  { %518 = vsyncadd [#allocation4], 4294967040 }
 0x1dc   :  { %417 = vsyncpa [#allocation3], 1 }
 0x1dd   :  { %418 = vsyncpa [#allocation4], 1 }

</bundles_post_ra>
